<compile_context>
chip_gen: v6e
topology: v6e:2x2x1
jax: 0.10.0
libtpu: 0.0.40
codegen_flags: <defaults>
</compile_context>

<pallas_src>
import functools

import jax
import jax.numpy as jnp
from jax import lax
from jax.experimental import pallas as pl
from jax.experimental.pallas import tpu as pltpu


# ---------------------------------------------------------------------------
# Fused kernel: one combined one-hot matmul, one lane-dense output slab.
# ---------------------------------------------------------------------------
def _encoder_kernel(ids_ref, tbl_ref, out_ref, *, num_tag_ids):
    n_ids = ids_ref.shape[0]          # T + B
    vocab = tbl_ref.shape[0]          # num_tags + num_categories
    T = num_tag_ids

    ids = ids_ref[...]                                            # (T+B, 1) int32
    iota = lax.broadcasted_iota(jnp.int32, (n_ids, vocab), 1)
    onehot = (iota == ids).astype(jnp.float32)                    # (T+B, vocab)

    # Row 0 = tag counts (tag ids < num_tags, so category columns are zero);
    # rows 1..B = category one-hots (ids pre-offset by num_tags).
    counts = jnp.sum(onehot[:T], axis=0, keepdims=True)           # (1, vocab)
    lhs = jnp.concatenate([counts, onehot[T:]], axis=0)           # (1+B, vocab)

    # Single MXU matmul -> single (1+B, D) lane-dense store.
    out_ref[...] = jnp.dot(
        lhs.astype(tbl_ref.dtype), tbl_ref[...],
        preferred_element_type=jnp.float32,
    ).astype(out_ref.dtype)


def categorical_encode(table, num_tags, tags, categories):
    """table: (num_tags + num_categories, D) row-concatenated embedding table.

    Returns (sum(tag_table[tags], axis=0), cat_table[categories])."""
    T = tags.shape[0]
    B = categories.shape[0]
    vocab, D = table.shape

    # One packed index operand: tag ids, then category ids offset by num_tags.
    ids = jnp.concatenate(
        [tags.astype(jnp.int32), categories.astype(jnp.int32) + num_tags]
    ).reshape(T + B, 1)

    # Explicit VMEM budget: table + one-hot temporaries + output, with
    # headroom, clamped to [16 MiB, 64 MiB] so it is valid on v5e/v6e/v7x.
    itemsize = jnp.dtype(table.dtype).itemsize
    est = (
        vocab * D * itemsize            # resident table
        + (T + B) * vocab * 4 * 3       # iota / compare / one-hot temporaries
        + (1 + B) * D * 4               # output slab
        + (T + B) * 128 * 4             # ids (lane-padded)
    )
    vmem_limit = int(min(max(4 * est, 16 << 20), 64 << 20))

    out = pl.pallas_call(
        functools.partial(_encoder_kernel, num_tag_ids=T),
        out_shape=jax.ShapeDtypeStruct((1 + B, D), table.dtype),
        in_specs=[
            pl.BlockSpec(memory_space=pltpu.MemorySpace.VMEM),  # packed ids
            pl.BlockSpec(memory_space=pltpu.MemorySpace.VMEM),  # combined table
        ],
        out_specs=pl.BlockSpec(memory_space=pltpu.MemorySpace.VMEM),
        compiler_params=pltpu.CompilerParams(vmem_limit_bytes=vmem_limit),
    )(ids, table)

    return out[0], out[1:]  # (D,), (B, D)


# ---------------------------------------------------------------------------
# Module wrapper
# ---------------------------------------------------------------------------
class CategoricalEncoder:
    def __init__(self, num_tags, num_categories, embedding_dim, key):
        k1, k2 = jax.random.split(key)
        # nn.Embedding default init: N(0, 1)
        self.num_tags = num_tags
        self.tag_embedding = jax.random.normal(
            k1, (num_tags, embedding_dim), dtype=jnp.float32
        )
        self.category_embedding = jax.random.normal(
            k2, (num_categories, embedding_dim), dtype=jnp.float32
        )
        # Row-concatenate once at init -> single table operand per forward.
        self.table = jnp.concatenate(
            [self.tag_embedding, self.category_embedding], axis=0
        )

    def __call__(self, tags, categories):
        return categorical_encode(self.table, self.num_tags, tags, categories)


if __name__ == "__main__":
    key = jax.random.PRNGKey(0)
    k_params, k_tags, k_cats = jax.random.split(key, 3)

    num_tags, num_categories, embedding_dim = 16, 8, 128
    T, B = 8, 4  # number of tag indices / category indices in the input

    enc = CategoricalEncoder(num_tags, num_categories, embedding_dim, k_params)

    tags = jax.random.randint(k_tags, (T,), 0, num_tags, dtype=jnp.int32)
    categories = jax.random.randint(k_cats, (B,), 0, num_categories, dtype=jnp.int32)

    tags_encoded, categories_encoded = enc(tags, categories)
    jax.block_until_ready((tags_encoded, categories_encoded))

    # Pure-JAX reference check
    ref_tags = jnp.sum(jnp.take(enc.tag_embedding, tags, axis=0), axis=0)
    ref_cats = jnp.take(enc.category_embedding, categories, axis=0)
    assert tags_encoded.shape == (embedding_dim,)
    assert categories_encoded.shape == (B, embedding_dim)
    assert jnp.allclose(tags_encoded, ref_tags, atol=1e-5)
    assert jnp.allclose(categories_encoded, ref_cats, atol=1e-5)

    print("KERNEL_OK")
</pallas_src>

<mosaic_0001>
module attributes {stable_mosaic.version = 11 : i64} {
  func.func @_encoder_kernel(%arg0: memref<12x1xi32, #tpu.memory_space<vmem>>, %arg1: memref<24x128xf32, #tpu.memory_space<vmem>>, %arg2: memref<5x128xf32, #tpu.memory_space<vmem>>) attributes {dimension_semantics = [], scalar_prefetch = 0 : i64, scratch_operands = 0 : i64, tpu.core_type = #tpu.core_type<tc>} {
    %c0 = arith.constant 0 : index
    %c0_0 = arith.constant 0 : index
    %0 = vector.load %arg0[%c0, %c0_0] : memref<12x1xi32, #tpu.memory_space<vmem>>, vector<12x1xi32>
    %1 = tpu.iota {dimensions = array<i32: 1>} : vector<12x24xi32>
    %2 = vector.broadcast %0 : vector<12x1xi32> to vector<12x24xi32>
    %3 = arith.cmpi eq, %1, %2 : vector<12x24xi32>
    %4 = arith.extui %3 : vector<12x24xi1> to vector<12x24xi32>
    %5 = arith.sitofp %4 : vector<12x24xi32> to vector<12x24xf32>
    %6 = vector.extract_strided_slice %5 {offsets = [0, 0], sizes = [8, 24], strides = [1, 1]} : vector<12x24xf32> to vector<8x24xf32>
    %cst = arith.constant dense<0.000000e+00> : vector<24xf32>
    %7 = vector.multi_reduction <add>, %6, %cst [0] : vector<8x24xf32> to vector<24xf32>
    %8 = vector.shape_cast %7 : vector<24xf32> to vector<1x24xf32>
    %9 = vector.extract_strided_slice %5 {offsets = [8, 0], sizes = [4, 24], strides = [1, 1]} : vector<12x24xf32> to vector<4x24xf32>
    %10 = tpu.concatenate %8, %9 in 0 : vector<1x24xf32>, vector<4x24xf32> -> vector<5x24xf32>
    %c0_1 = arith.constant 0 : index
    %c0_2 = arith.constant 0 : index
    %11 = vector.load %arg1[%c0_1, %c0_2] : memref<24x128xf32, #tpu.memory_space<vmem>>, vector<24x128xf32>
    %cst_3 = arith.constant dense<0.000000e+00> : vector<5x128xf32>
    %12 = tpu.matmul %10, %11, %cst_3 {dimension_numbers = #tpu.dot_dimension_numbers<[1], [0], [0], [1], [0, 0, 1, 1], [], []>} : vector<5x24xf32>, vector<24x128xf32>, vector<5x128xf32> -> vector<5x128xf32>
    %c0_4 = arith.constant 0 : index
    %c0_5 = arith.constant 0 : index
    %13 = vector.load %arg2[%c0_4, %c0_5] : memref<5x128xf32, #tpu.memory_space<vmem>>, vector<5x128xf32>
    tpu.vector_store %arg2[%c0_4, %c0_5], %12 {strides = array<i32>} : memref<5x128xf32, #tpu.memory_space<vmem>>, vector<5x128xf32>,
    return
  }
}

</mosaic_0001>

<bundles_post_ra>
// kernel: tpu_custom_call.1
= control target key start
LH: loop header
LB: loop body
LE: loop exit
PB: predicated region body
PF: predicated region fallthrough
CT: control target
= control target key end

     0   :  { %7 = vsyncpa [#allocation3], 0  ;;  %s251_s0 = inlined_call_operand.vmem [shape: s32[12,1], index: 0, kind: input, shape index: {}]   ;;  %s252_s1 = inlined_call_operand.hbm [shape: f32[24,128], index: 1, kind: input, shape index: {}]   ;;  %s253_s2 = inlined_call_operand.hbm [shape: f32[5,128], index: 2, kind: output, shape index: {}]  }
   0x1   :  { %8 = vsyncpa [#allocation4], 0  ;;  %s215_s9 = smov [#allocation2]  }
   0x2   :  { %s16_s10 = sshll.u32 %s215_s9, 4  ;;  %s17_s10 = int_to_ptr.vmem [resolvable:$true] %s16_s10 }
   0x3   :  { %s179_s11 = scalar_lea.vmem %s17_s10, 384  ;;  %p184_p1 = scmp.lt.s32.totalorder %s17_s10, %s17_s10 }
   0x4   :  { %p180_p0 = scmp.ne.s32.totalorder %s17_s10, %s179_s11  ;;  %p185_p2 = scmp.lt.s32.totalorder %s179_s11, %s179_s11 }
   0x6   :  { %p186_p3 = por %p185_p2, %p184_p1 }
   0x8   :  { %p187_p4 = pnand %p186_p3, %p180_p0 }
   0xa   :  { %190 = shalt.err (!%p187_p4)
}
   0xb   :  { %s216_s12 = smov 128   ;;  %s217_s13 = smov 8  }
   0xc   :  { %22 = dma.hbm_to_vmem [thread:$0]  %s252_s1, 384, %s17_s10, [#allocation3], %s216_s12, %s216_s12, %s217_s13  }
   0xd   :  { %211 = dma.done.wait [#allocation3], 384  }
   0xe   :  { %212 = vsyncadd [#allocation3], 4294966912  ;;  %v218_v0 = vmov 0   ;;  %v219_v1 = vmov 0.0   ;;  %v26_v2 = vld [vmem:[%s251_s0] sm:$0xff]  ;;  %v57_v4 = vld [vmem:[#allocation2 + $0x10] sm:$0xff]  ;;  %v28_v7 = vlaneseq }
   0xf   :  { %170 = vset.pattern.permute.xlu0 %v218_v0  ;;  %154 = vmatprep.subr.mxu0 %v219_v1  ;;  %v27_v3 = vld [vmem:[%s251_s0 + $0x8] sm:$0xf]  ;;  %v55_v6 = vld [vmem:[#allocation2] sm:$0xff]  ;;  %vm220_vm0 = vmmov 0   ;;  %vm42_vm1 = vcmask 195584   ;;  %vm53_vm4 = vcmask 1040384  }
  0x10   :  { %31 = vperm.xlu0 %170, %v26_v2   ;;  %155 = vmatpush3.msra.mxu0 %v57_v4  ;;  %v56_v5 = vld [vmem:[#allocation2 + $0x8] sm:$0xff]  ;;  %v29_v8 = vand.u32 127, %v28_v7  ;;  %s221_s0 = smov [#allocation5]  }
  0x11   :  { %156 = vmatprep.subr.mxu0 %v219_v1  ;;  %160 = vmatprep.mubr.msk.f32.mxu0 %vm220_vm0, %v219_v1  ;;  %s138_s1 = sshll.u32 %s221_s0, 4  ;;  %s139_s1 = int_to_ptr.vmem [resolvable:$true] %s138_s1 }
  0x12   :  { %157 = vmatpush3.msra.mxu0 %v56_v5  ;;  %s191_s20 = scalar_lea.vmem %s139_s1, 128  ;;  %p196_p6 = scmp.lt.s32.totalorder %s139_s1, %s139_s1 }
  0x13   :  { %158 = vmatprep.subr.mxu0 %v219_v1  ;;  %p192_p5 = scmp.ne.s32.totalorder %s139_s1, %s191_s20  ;;  %p197_p7 = scmp.lt.s32.totalorder %s191_s20, %s191_s20 }
  0x14   :  { %34 = vperm.xlu0 %170, %v27_v3   ;;  %159 = vmatpush3.msra.mxu0 %v55_v6 }
  0x15   :  { %p198_p8 = por %p197_p7, %p196_p6 }
  0x17   :  { %p199_p9 = pnand %p198_p8, %p192_p5 }
  0x8b   :  { %v32_v9 = vpop.permute.xlu0 %31 }
  0x8c   :  { %vm36_vm2 = vcmp.eq.s32.totalorder %v29_v8, %v32_v9 }
  0x8d   :  { %v147_v10 = vsel %vm36_vm2, 1.0, %v219_v1 }
  0x8e   :  { %v43_v11 = vsel %vm42_vm1, %v147_v10, 0.0 }
  0x8f   :  { %v44_v12 = vrot.slane %v43_v11, 4  ;;  %v35_v13 = vpop.permute.xlu0 %34 }
  0x90   :  { %vm37_vm3 = vcmp.eq.s32.totalorder %v29_v8, %v35_v13 }
  0x91   :  { %v45_v14 = vadd.f32 %v44_v12, %v43_v11  ;;  %v148_v17 = vsel %vm37_vm3, 1.0, %v219_v1 }
  0x92   :  { %v51_v20 = vrot.slane %v148_v17, 7 }
  0x93   :  { %v46_v15 = vrot.slane %v45_v14, 2 }
  0x95   :  { %v47_v16 = vadd.f32 %v46_v15, %v45_v14 }
  0x97   :  { %v48_v18 = vrot.slane %v47_v16, 1 }
  0x99   :  { %v49_v19 = vadd.f32 %v48_v18, %v47_v16 }
  0x9b   :  { %v54_v21 = vsel %vm53_vm4, %v49_v19, %v51_v20 }
  0x9c   :  { %161 = vmatmul.mubr.msk.f32.vlgmr.msra.gmra.mxu0 %vm42_vm1, %v54_v21 }
 0x15c   :  { %v127_v22 = vpop.f32.mrf.mxu0 }
 0x15d   :  { %131 = vst [vmem:[#allocation5] sm:$0x1f] %v127_v22 }
 0x15e   :  { %v162_v23 = vpop.f32.mrf.mxu0 }
 0x15f   :  { %202 = shalt.err (!%p199_p9)
}
 0x160   :  { %141 = dma.vmem_to_hbm [thread:$0]  %s139_s1, 128, %s253_s2, [#allocation4]  }
 0x161   :  { %213 = dma.done.wait [#allocation4], 128  }
 0x162   :  { %214 = vsyncadd [#allocation4], 4294967168 }
 0x163   :  { %145 = vsyncpa [#allocation3], 1 }
 0x164   :  { %146 = vsyncpa [#allocation4], 1 }

</bundles_post_ra>
